<compile_context>
chip_gen: v6e
topology: v6e:2x2x1
jax: 0.10.0
libtpu: 0.0.40
codegen_flags: <defaults>
</compile_context>

<pallas_src>
import functools

import numpy as np
import jax
import jax.numpy as jnp
from jax.experimental import pallas as pl
from jax.experimental.pallas import tpu as pltpu

_HALF_LOG_2PI = 0.5 * float(np.log(2.0 * np.pi))

_TARGET_BLOCK_BYTES = 4 * 1024 * 1024   # ~4 MiB/input block: HBM-roofline sweet spot
_MAX_BLOCK_BYTES = 5 * 1024 * 1024      # 2 inputs x 2 buffers + temps << vmem limit
_VMEM_LIMIT_BYTES = 48 * 1024 * 1024    # <= 48 MiB: safe on v7x (64 MiB/TC) and below


# ---------------------------------------------------------------------------
# Kernel
# ---------------------------------------------------------------------------
def _log_prob_kernel(lv_ref, sel_ref, z_ref, y_ref, lp_ref, *, d):
    """Independent(Normal(z, std), 1).log_prob(y) for one (tb, group*d) row block.

    lv_ref  : (1,) SMEM        -- log_variance parameter
    sel_ref : (group, w) VMEM  -- one-hot lane -> packed-sub-row indicator (resident)
    z_ref   : (tb, w) VMEM     -- packed z rows
    y_ref   : (tb, w) VMEM     -- packed y rows
    lp_ref  : (group, tb) VMEM -- log-prob, transposed so stores are lane-dense
    """
    log_var = lv_ref[0]
    inv_var = jnp.exp(-log_var)
    row_const = -d * (0.5 * log_var + _HALF_LOG_2PI)      # hoisted scalar term

    # One-shot upcast in-kernel (inputs stay bf16/f16 over HBM wire).
    diff = y_ref[...].astype(jnp.float32) - z_ref[...].astype(jnp.float32)
    sq = diff * diff                                      # (tb, w) f32

    # Grouped row-sum on the otherwise-idle MXU, emitted directly in (group, tb)
    # orientation (NT contraction == q @ k.T pattern) -> lane-dense output store.
    ssq_t = jax.lax.dot_general(
        sel_ref[...], sq, (((1,), (1,)), ((), ())),
        preferred_element_type=jnp.float32)               # (group, tb)

    lp_ref[...] = -0.5 * inv_var * ssq_t + row_const


# ---------------------------------------------------------------------------
# Wrappers
# ---------------------------------------------------------------------------
def normal_mean_param_forward(log_variance, z):
    """Parameters of Independent(Normal(loc=z, scale=std_dev), 1).

    loc is z itself (identity, no HBM copy).  scale is the scalar std-dev in the
    parameter's dtype; downstream code broadcasts it lazily instead of
    materializing a [B, D] tensor.  Plain JAX per review: a pallas_call to compute
    a single scalar exp is pure launch overhead.
    """
    scale = jnp.exp(0.5 * log_variance)
    return z, scale


def _log_prob_ref(log_variance, z, y):
    """Pure-JAX reference == small-tensor fast path."""
    log_var = jnp.asarray(log_variance, jnp.float32).reshape(())
    zf = z.astype(jnp.float32)
    yf = y.astype(jnp.float32)
    ssq = jnp.sum((yf - zf) ** 2, axis=-1)
    return -0.5 * jnp.exp(-log_var) * ssq - z.shape[-1] * (0.5 * log_var + _HALF_LOG_2PI)


def _choose_block_rows(bp, row_bytes):
    """Rows per block: ~4 MiB target, multiple of 128 when tiling (keeps the
    transposed output block's lane dim 128-aligned and satisfies any dtype's
    sublane packing), and >=2 grid steps when the batch is large enough so both
    of v7x's TensorCores get work."""
    tb = max(128, (_TARGET_BLOCK_BYTES // row_bytes) // 128 * 128)
    if tb >= bp:
        if bp >= 2 * 128:
            half = ((pl.cdiv(bp, 2) + 127) // 128) * 128
            tb = min(tb, half)
        if tb >= bp:
            tb = bp                     # single block: full-dim block shape is legal
    return tb


def normal_mean_param_log_prob(log_variance, z, y, *, use_pallas=None):
    """log p(y | z) of Independent(Normal(z, std_dev), 1); returns z.shape[:-1]."""
    batch_shape = z.shape[:-1]
    D = z.shape[-1]
    B = int(np.prod(batch_shape, dtype=np.int64)) if batch_shape else 1

    if use_pallas is None:
        # Below ~64K elements the ~0.35us/step launch overhead dominates; let XLA fuse.
        use_pallas = (B * D) >= (1 << 16)
    if not use_pallas:
        return _log_prob_ref(log_variance, z, y)

    # Generalized lane packing: fold `group` consecutive rows into one packed row so
    # the kernel's last dim w = group*D is a multiple of 128 lanes whenever possible.
    group = int(np.lcm(D, 128)) // D
    if B % group != 0:
        group = 1                        # padding B would copy HBM; keep identity reshape
    bp = B // group
    w = group * D

    itemsize = z.dtype.itemsize          # dtype-aware sizing (bf16 -> 2x rows/block)
    tb = _choose_block_rows(bp, w * itemsize)
    if tb * w * itemsize > _MAX_BLOCK_BYTES:
        # TODO(synk): very wide rows -- add a second ("arbitrary") grid axis over the
        # feature dim with a VMEM ssq accumulator instead of falling back to XLA.
        return _log_prob_ref(log_variance, z, y)

    zz = z.reshape(bp, w)                # metadata-only reshapes (row-major)
    yy = y.reshape(bp, w)
    lv = jnp.asarray(log_variance, jnp.float32).reshape(1)

    # One-hot (group, w) indicator: lane k belongs to packed sub-row k // D.
    # Built once on the host, resident in VMEM across the whole grid (constant map).
    sel_t = jnp.asarray(
        ((np.arange(w) // D)[None, :] == np.arange(group)[:, None]).astype(np.float32))

    grid = (pl.cdiv(bp, tb),)            # tail block: OOB writes are discarded
    lp = pl.pallas_call(
        functools.partial(_log_prob_kernel, d=D),
        out_shape=jax.ShapeDtypeStruct((group, bp), jnp.float32),
        grid=grid,
        in_specs=[
            pl.BlockSpec(memory_space=pltpu.SMEM),        # log_variance (1,)
            pl.BlockSpec((group, w), lambda i: (0, 0)),   # sel_t (grid-resident)
            pl.BlockSpec((tb, w), lambda i: (i, 0)),      # z rows
            pl.BlockSpec((tb, w), lambda i: (i, 0)),      # y rows
        ],
        out_specs=pl.BlockSpec((group, tb), lambda i: (0, i)),
        compiler_params=pltpu.CompilerParams(
            dimension_semantics=("parallel",),            # megacore split on v7x
            vmem_limit_bytes=_VMEM_LIMIT_BYTES,
        ),
    )(lv, sel_t, zz, yy)

    # (group, bp): element (g, p) is the log-prob of original row p*group + g.
    # Un-permuting is a tiny (B-element) XLA transpose, not kernel work.
    return lp.T.reshape(batch_shape)


# ---------------------------------------------------------------------------
# Main
# ---------------------------------------------------------------------------
if __name__ == "__main__":
    key = jax.random.PRNGKey(0)
    keys = jax.random.split(key, 10)

    # Module parameter (torch default is zeros(1); nonzero exercises the exp path).
    log_variance = jnp.array([-0.5], dtype=jnp.float32)
    std_ref = float(np.exp(0.5 * -0.5))

    def check(z, y, atol=1e-2, rtol=1e-3):
        lp = normal_mean_param_log_prob(log_variance, z, y, use_pallas=True)
        jax.block_until_ready(lp)
        ref = _log_prob_ref(log_variance, z.astype(jnp.float32), y.astype(jnp.float32))
        assert lp.shape == z.shape[:-1], (lp.shape, z.shape)
        assert np.allclose(np.asarray(lp), np.asarray(ref), atol=atol, rtol=rtol), (
            float(np.max(np.abs(np.asarray(lp) - np.asarray(ref)))))

    # Forward: loc is the identity of z, scale is the scalar std-dev (param dtype).
    z0 = jax.random.normal(keys[0], (8, 32), dtype=jnp.float32)
    loc, scale = normal_mean_param_forward(log_variance, z0)
    jax.block_until_ready((loc, scale))
    assert np.array_equal(np.asarray(loc), np.asarray(z0))
    assert np.allclose(np.asarray(scale), std_ref, atol=1e-6)
    assert scale.dtype == log_variance.dtype

    # 1) small D, lane-packed (group=4, w=128), single block.
    check(jax.random.normal(keys[1], (8, 32), jnp.float32),
          jax.random.normal(keys[2], (8, 32), jnp.float32))
    # 2) D=160: generalized lcm packing (group=4, w=640).
    check(jax.random.normal(keys[3], (64, 160), jnp.float32),
          jax.random.normal(keys[4], (64, 160), jnp.float32))
    # 3) multi-block grid (bp=256 -> two 128-row blocks, lane-dense tiled output,
    #    resident sel across steps, megacore-splittable).
    check(jax.random.normal(keys[5], (1024, 32), jnp.float32),
          jax.random.normal(keys[6], (1024, 32), jnp.float32))
    # 4) bf16 inputs: dtype-aware block sizing + in-kernel upcast (group=8, w=384).
    check(jax.random.normal(keys[7], (512, 48), jnp.bfloat16),
          jax.random.normal(keys[8], (512, 48), jnp.bfloat16), atol=5e-2, rtol=5e-3)
    # 5) D multiple of 128 -> group=1 path (ones-row reduction via the same NT dot).
    z5 = jax.random.normal(keys[9], (96, 256), jnp.float32)
    check(z5, z5 * 0.5)

    print("KERNEL_OK")
</pallas_src>

<mosaic_0001>
module attributes {stable_mosaic.version = 11 : i64} {
  func.func @_log_prob_kernel(%arg0: i32, %arg1: memref<1xf32, #tpu.memory_space<smem>>, %arg2: memref<4x128xf32, #tpu.memory_space<vmem>>, %arg3: memref<2x128xf32, #tpu.memory_space<vmem>>, %arg4: memref<2x128xf32, #tpu.memory_space<vmem>>, %arg5: memref<4x2xf32, #tpu.memory_space<vmem>>) attributes {dimension_semantics = [#tpu.dimension_semantics<parallel>], iteration_bounds = array<i64: 1>, scalar_prefetch = 0 : i64, scratch_operands = 0 : i64, tpu.core_type = #tpu.core_type<tc>, window_params = [{transform_indices = @transform_0, window_bounds = array<i64: 1>}, {pipeline_mode = #tpu.pipeline_mode<synchronous>, transform_indices = @transform_1, window_bounds = array<i64: 4, 128>}, {transform_indices = @transform_2, window_bounds = array<i64: 2, 128>}, {transform_indices = @transform_3, window_bounds = array<i64: 2, 128>}, {transform_indices = @transform_4, window_bounds = array<i64: 4, 2>}]} {
    %c0 = arith.constant 0 : index
    %0 = memref.load %arg1[%c0] : memref<1xf32, #tpu.memory_space<smem>>
    %cst = arith.constant 0.000000e+00 : f32
    %1 = arith.subf %cst, %0 : f32
    %2 = math.exp %1 : f32
    %cst_0 = arith.constant 5.000000e-01 : f32
    %3 = arith.mulf %cst_0, %0 : f32
    %cst_1 = arith.constant 0.918938517 : f32
    %4 = arith.addf %3, %cst_1 : f32
    %cst_2 = arith.constant -3.200000e+01 : f32
    %5 = arith.mulf %cst_2, %4 : f32
    %c0_3 = arith.constant 0 : index
    %c0_4 = arith.constant 0 : index
    %6 = vector.load %arg4[%c0_3, %c0_4] : memref<2x128xf32, #tpu.memory_space<vmem>>, vector<2x128xf32>
    %c0_5 = arith.constant 0 : index
    %c0_6 = arith.constant 0 : index
    %7 = vector.load %arg3[%c0_5, %c0_6] : memref<2x128xf32, #tpu.memory_space<vmem>>, vector<2x128xf32>
    %8 = arith.subf %6, %7 : vector<2x128xf32>
    %9 = arith.mulf %8, %8 : vector<2x128xf32>
    %c0_7 = arith.constant 0 : index
    %c0_8 = arith.constant 0 : index
    %10 = vector.load %arg2[%c0_7, %c0_8] : memref<4x128xf32, #tpu.memory_space<vmem>>, vector<4x128xf32>
    %cst_9 = arith.constant dense<0.000000e+00> : vector<4x2xf32>
    %11 = tpu.matmul %10, %9, %cst_9 {dimension_numbers = #tpu.dot_dimension_numbers<[1], [1], [0], [0], [0, 0, 1, 0], [], []>} : vector<4x128xf32>, vector<2x128xf32>, vector<4x2xf32> -> vector<4x2xf32>
    %cst_10 = arith.constant -5.000000e-01 : f32
    %12 = arith.mulf %cst_10, %2 : f32
    %13 = vector.broadcast %12 : f32 to vector<4x2xf32>
    %14 = arith.mulf %13, %11 : vector<4x2xf32>
    %15 = vector.broadcast %5 : f32 to vector<4x2xf32>
    %16 = arith.addf %14, %15 : vector<4x2xf32>
    %c0_11 = arith.constant 0 : index
    %c0_12 = arith.constant 0 : index
    %17 = vector.load %arg5[%c0_11, %c0_12] : memref<4x2xf32, #tpu.memory_space<vmem>>, vector<4x2xf32>
    tpu.vector_store %arg5[%c0_11, %c0_12], %16 {strides = array<i32>} : memref<4x2xf32, #tpu.memory_space<vmem>>, vector<4x2xf32>,
    return
  }
  func.func @transform_0(%arg0: i32) -> i32 {
    %c0_i32 = arith.constant 0 : i32
    %c0_i32_0 = arith.constant 0 : i32
    return %c0_i32 : i32
  }
  func.func @transform_1(%arg0: i32) -> (i32, i32) {
    %c0_i32 = arith.constant 0 : i32
    %c0_i32_0 = arith.constant 0 : i32
    %c0_i32_1 = arith.constant 0 : i32
    return %c0_i32, %c0_i32_0 : i32, i32
  }
  func.func @transform_2(%arg0: i32) -> (i32, i32) {
    %c0_i32 = arith.constant 0 : i32
    %c0_i32_0 = arith.constant 0 : i32
    return %arg0, %c0_i32 : i32, i32
  }
  func.func @transform_3(%arg0: i32) -> (i32, i32) {
    %c0_i32 = arith.constant 0 : i32
    %c0_i32_0 = arith.constant 0 : i32
    return %arg0, %c0_i32 : i32, i32
  }
  func.func @transform_4(%arg0: i32) -> (i32, i32) {
    %c0_i32 = arith.constant 0 : i32
    %c0_i32_0 = arith.constant 0 : i32
    return %c0_i32, %arg0 : i32, i32
  }
}

</mosaic_0001>

<bundles_post_ra>
// kernel: tpu_custom_call.1
= control target key start
LH: loop header
LB: loop body
LE: loop exit
PB: predicated region body
PF: predicated region fallthrough
CT: control target
= control target key end

     0   :  { %10 = vsyncpa [#allocation4], 0  ;;  %s162_s15 = smov [#allocation3]   ;;  %s208_s0 = inlined_call_operand.<no memory space> [shape: f32[1], index: 0, kind: input, shape index: {}]   ;;  %s209_s1 = inlined_call_operand.hbm [shape: f32[4,128], index: 1, kind: input, shape index: {}]   ;;  %s210_s2 = inlined_call_operand.vmem [shape: f32[2,128], index: 2, kind: input, shape index: {}]   ;;  %s211_s3 = inlined_call_operand.vmem [shape: f32[2,128], index: 3, kind: input, shape index: {}]   ;;  %s212_s4 = inlined_call_operand.vmem [shape: f32[4,2], index: 4, kind: output, shape index: {}]  }
   0x1   :  { %s19_s16 = sshll.u32 %s162_s15, 4  ;;  %s20_s16 = int_to_ptr.vmem [resolvable:$true] %s19_s16 }
   0x2   :  { %s148_s17 = scalar_lea.vmem %s20_s16, 64  ;;  %p153_p1 = scmp.lt.s32.totalorder %s20_s16, %s20_s16 }
   0x3   :  { %p149_p0 = scmp.ne.s32.totalorder %s20_s16, %s148_s17  ;;  %p154_p2 = scmp.lt.s32.totalorder %s148_s17, %s148_s17 }
   0x5   :  { %p155_p3 = por %p154_p2, %p153_p1 }
   0x7   :  { %p156_p4 = pnand %p155_p3, %p149_p0 }
   0x9   :  { %159 = shalt.err (!%p156_p4)
}
   0xa   :  { %22 = dma.hbm_to_vmem [thread:$0]  %s209_s1, 64, %s20_s16, [#allocation4]  }
   0xb   :  { %160 = dma.done.wait [#allocation4], 64  }
   0xc   :  { %161 = vsyncadd [#allocation4], 4294967232  ;;  %s31_s22 = ssub.f32 0.0, %s208_s0  ;;  %v163_v0 = vmov 0.0   ;;  %vm164_vm0 = vmmov 0   ;;  %s36_s28 = smul.f32 0.5, %s208_s0 }
   0xd   :  { %128 = vmatprep.subr.mxu0 %v163_v0  ;;  %130 = vmatprep.mubr.msk.f32.mxu0 %vm164_vm0, %v163_v0  ;;  %v39_v3 = vld [vmem:[%s211_s3] sm:$0x3]  ;;  %vm119_vm1 = vcmask 11264  }
   0xe   :  { %v32_v1 = vstv %s31_s22  ;;  %v40_v4 = vld [vmem:[%s210_s2] sm:$0x3]  ;;  %s37_s30 = sadd.f32 0.9189385, %s36_s28 }
   0xf   :  { %v33_v2 = vmul.f32 1.442695, %v32_v1  ;;  %v41_v5 = vsub.f32 %v39_v3, %v40_v4  ;;  %v43_v7 = vld [vmem:[#allocation3] sm:$0xf] }
  0x10   :  { %s38_s6 = smul.f32 -32.0, %s37_s30 }
  0x11   :  { %138 = vpow2.f32 %v33_v2  ;;  %v42_v6 = vmul.f32 %v41_v5, %v41_v5 }
  0x12   :  { %v117_v11 = vstv %s38_s6 }
  0x13   :  { %129 = vmatpush3.xpose.msra.mxu0 %v42_v6 }
  0x16   :  { %131 = vmatmul.mubr.f32.vlgmr.msra.gmra.mxu0 %v43_v7 }
  0x1e   :  { %v139_v8 = vpop.eup %138 }
  0x1f   :  { %133 = vpush %v139_v8 }
  0x50   :  { %s134_s29 = spop %133 }
  0x51   :  { %s114_s5 = smul.f32 -0.5, %s134_s29 }
  0x53   :  { %v115_v9 = vstv %s114_s5 }
  0xd6   :  { %v110_v10 = vpop.f32.mrf.mxu0 }
  0xd7   :  { %v116_v12 = vmul.f32 %v115_v9, %v110_v10 }
  0xd8   :  { %v132_v13 = vpop.f32.mrf.mxu0 }
  0xd9   :  { %v118_v14 = vadd.f32 %v117_v11, %v116_v12 }
  0xdb   :  { %120 = vst.msk [vmem:[%s212_s4] sm:$0xf] %vm119_vm1, %v118_v14 }
  0xdc   :  { %125 = vsyncpa [#allocation4], 1 }

</bundles_post_ra>
